<compile_context>
chip_gen: v5e
topology: v5e:2x2
jax: 0.10.0
libtpu: 0.0.40
codegen_flags: <defaults>
</compile_context>

<pallas_src>
import jax
import jax.numpy as jnp
from jax.experimental import pallas as pl
from jax.experimental.pallas import tpu as pltpu

_X_DOUBLE_BUFFER_BUDGET = 24 * 1024 * 1024   # bytes for the 2x pipelined x tiles
_VMEM_LIMIT_BYTES = 32 * 1024 * 1024


def linear_kernel(x_ref, w_ref, b_ref, o_ref):
    # x_ref: (tb, D) VMEM (native dtype)   w_ref: (1, D) VMEM
    # b_ref: (1,) SMEM scalar              o_ref: (1, 1, tb) VMEM (lane-dense)
    x = x_ref[...]
    w = w_ref[...]
    if x.dtype != w.dtype:
        ct = jnp.promote_types(x.dtype, w.dtype)
        x = x.astype(ct)
        w = w.astype(ct)
    # (1, D) x (tb, D) contracted over D -> (1, tb): reduction on the MXU with
    # f32 accumulation, already in the lane-dense packed-output layout.
    acc = jax.lax.dot_general(
        w, x,
        dimension_numbers=(((1,), (1,)), ((), ())),
        preferred_element_type=jnp.float32,
    )
    o_ref[...] = (acc + b_ref[0]).astype(o_ref.dtype)[None]


def _pick_batch_tile(B, D, itemsize):
    """Largest batch tile (multiple of 8) whose double-buffered x block fits
    the budget, capped near cdiv(B, 2) so a v7x megacore gets >= 2 grid steps."""
    d_padded = ((D + 127) // 128) * 128           # VMEM pads lanes to 128
    bytes_per_row = d_padded * itemsize
    max_rows = max(8, (_X_DOUBLE_BUFFER_BUDGET // (2 * bytes_per_row)) // 8 * 8)
    half = max(8, ((-(-B // 2)) + 7) // 8 * 8)    # cdiv(B, 2) rounded up to 8
    tb = min(max_rows, half)
    if tb >= B:
        return B                                  # single full-extent tile
    return max(8, (tb // 8) * 8)


def linear_forward(x, weight, bias):
    """Pallas equivalent of nn.Linear(input_dim, 1): y = x @ weight.T + bias.

    Args:
      x:      (B, D) array (any float dtype; streamed in its native dtype)
      weight: (1, D) array (PyTorch nn.Linear layout, kept lane-dense)
      bias:   (1,)   array
    Returns:
      (B, 1) array in the promoted x/weight dtype.
    """
    B, D = x.shape
    out_dtype = jnp.result_type(x.dtype, weight.dtype)
    tb = _pick_batch_tile(B, D, jnp.dtype(x.dtype).itemsize)
    num_tiles = pl.cdiv(B, tb)

    # TODO(synk): for D < 128 (lane-padded x tiles) fold k = 128 // D logical
    # rows per lane-row with a block-diagonal (128, k) weight to recover full
    # lane occupancy; skipped here to keep one simple, general kernel.
    packed = pl.pallas_call(
        linear_kernel,
        out_shape=jax.ShapeDtypeStruct((num_tiles, 1, tb), out_dtype),
        grid_spec=pl.GridSpec(
            grid=(num_tiles,),
            in_specs=[
                pl.BlockSpec((tb, D), lambda i: (i, 0)),             # x tiles (pipelined)
                pl.BlockSpec((1, D), lambda i: (0, 0)),              # weight (resident)
                pl.BlockSpec(memory_space=pltpu.MemorySpace.SMEM),   # bias scalar
            ],
            out_specs=pl.BlockSpec((1, 1, tb), lambda i: (i, 0, 0)),  # lane-dense row
        ),
        compiler_params=pltpu.CompilerParams(
            dimension_semantics=("parallel",),
            vmem_limit_bytes=_VMEM_LIMIT_BYTES,
        ),
    )(x, weight, bias.astype(jnp.float32))

    # Unpack the lane-dense tiles back to a (B, 1) column, dropping the padded
    # tail rows of the last (partial) tile.
    return packed.reshape(num_tiles * tb)[:B].reshape(B, 1)


if __name__ == "__main__":
    key = jax.random.PRNGKey(0)
    kx, kw, kb = jax.random.split(key, 3)

    batch, input_dim = 8, 32

    # Deterministic parameter init mimicking nn.Linear's U(-1/sqrt(D), 1/sqrt(D)).
    bound = 1.0 / (input_dim ** 0.5)
    weight = jax.random.uniform(kw, (1, input_dim), jnp.float32, -bound, bound)
    bias = jax.random.uniform(kb, (1,), jnp.float32, -bound, bound)

    x = jax.random.normal(kx, (batch, input_dim), jnp.float32)

    y = linear_forward(x, weight, bias)
    jax.block_until_ready(y)

    y_ref = x @ weight.T + bias
    assert y.shape == (batch, 1)
    assert jnp.allclose(y, y_ref, atol=1e-5, rtol=1e-5)

    # Also exercise the multi-tile grid + padded-tail unpack path (still small).
    batch2 = 24
    x2 = jax.random.normal(kx, (batch2, input_dim), jnp.float32)
    y2 = linear_forward(x2, weight, bias)
    jax.block_until_ready(y2)
    assert y2.shape == (batch2, 1)
    assert jnp.allclose(y2, x2 @ weight.T + bias, atol=1e-5, rtol=1e-5)

    print("KERNEL_OK")
</pallas_src>

<mosaic_0001>
module attributes {stable_mosaic.version = 11 : i64} {
  func.func @linear_kernel(%arg0: i32, %arg1: memref<8x32xf32, #tpu.memory_space<vmem>>, %arg2: memref<1x32xf32, #tpu.memory_space<vmem>>, %arg3: memref<1xf32, #tpu.memory_space<smem>>, %arg4: memref<1x1x8xf32, #tpu.memory_space<vmem>>) attributes {dimension_semantics = [#tpu.dimension_semantics<parallel>], iteration_bounds = array<i64: 1>, scalar_prefetch = 0 : i64, scratch_operands = 0 : i64, tpu.core_type = #tpu.core_type<tc>, window_params = [{transform_indices = @transform_0, window_bounds = array<i64: 8, 32>}, {pipeline_mode = #tpu.pipeline_mode<synchronous>, transform_indices = @transform_1, window_bounds = array<i64: 1, 32>}, {transform_indices = @transform_2, window_bounds = array<i64: 1>}, {transform_indices = @transform_3, window_bounds = array<i64: 1, 1, 8>}]} {
    %c0 = arith.constant 0 : index
    %c0_0 = arith.constant 0 : index
    %0 = vector.load %arg1[%c0, %c0_0] : memref<8x32xf32, #tpu.memory_space<vmem>>, vector<8x32xf32>
    %c0_1 = arith.constant 0 : index
    %c0_2 = arith.constant 0 : index
    %1 = vector.load %arg2[%c0_1, %c0_2] : memref<1x32xf32, #tpu.memory_space<vmem>>, vector<1x32xf32>
    %cst = arith.constant dense<0.000000e+00> : vector<1x8xf32>
    %2 = tpu.matmul %1, %0, %cst {dimension_numbers = #tpu.dot_dimension_numbers<[1], [1], [0], [0], [0, 0, 1, 0], [], []>} : vector<1x32xf32>, vector<8x32xf32>, vector<1x8xf32> -> vector<1x8xf32>
    %c0_3 = arith.constant 0 : index
    %3 = memref.load %arg3[%c0_3] : memref<1xf32, #tpu.memory_space<smem>>
    %4 = vector.broadcast %3 : f32 to vector<1x8xf32>
    %5 = arith.addf %2, %4 : vector<1x8xf32>
    %6 = vector.shape_cast %5 : vector<1x8xf32> to vector<1x1x8xf32>
    %c0_4 = arith.constant 0 : index
    %c0_5 = arith.constant 0 : index
    %c0_6 = arith.constant 0 : index
    %7 = vector.load %arg4[%c0_4, %c0_5, %c0_6] : memref<1x1x8xf32, #tpu.memory_space<vmem>>, vector<1x1x8xf32>
    tpu.vector_store %arg4[%c0_4, %c0_5, %c0_6], %6 {strides = array<i32>} : memref<1x1x8xf32, #tpu.memory_space<vmem>>, vector<1x1x8xf32>,
    return
  }
  func.func @transform_0(%arg0: i32) -> (i32, i32) {
    %c0_i32 = arith.constant 0 : i32
    %c0_i32_0 = arith.constant 0 : i32
    return %arg0, %c0_i32 : i32, i32
  }
  func.func @transform_1(%arg0: i32) -> (i32, i32) {
    %c0_i32 = arith.constant 0 : i32
    %c0_i32_0 = arith.constant 0 : i32
    %c0_i32_1 = arith.constant 0 : i32
    return %c0_i32, %c0_i32_0 : i32, i32
  }
  func.func @transform_2(%arg0: i32) -> i32 {
    %c0_i32 = arith.constant 0 : i32
    %c0_i32_0 = arith.constant 0 : i32
    return %c0_i32 : i32
  }
  func.func @transform_3(%arg0: i32) -> (i32, i32, i32) {
    %c0_i32 = arith.constant 0 : i32
    %c0_i32_0 = arith.constant 0 : i32
    %c0_i32_1 = arith.constant 0 : i32
    return %arg0, %c0_i32, %c0_i32_0 : i32, i32, i32
  }
}

</mosaic_0001>

<bundles_post_ra>
// kernel: tpu_custom_call.1
= control target key start
LH: loop header
LB: loop body
LE: loop exit
PB: predicated region body
PF: predicated region fallthrough
CT: control target
= control target key end

     0   :  { %9 = vsyncpa [#allocation4], 0  ;;  %s170_s0 = inlined_call_operand.hbm [shape: f32[8,32], index: 0, kind: input, shape index: {}]   ;;  %s171_s1 = inlined_call_operand.vmem [shape: f32[1,32], index: 1, kind: input, shape index: {}]   ;;  %s172_s2 = inlined_call_operand.<no memory space> [shape: f32[1], index: 2, kind: input, shape index: {}]   ;;  %s173_s3 = inlined_call_operand.hbm [shape: f32[1,1,8], index: 3, kind: output, shape index: {}]  }
   0x1   :  { %10 = vsyncpa [#allocation5], 0  ;;  %s16_s14 = sshll.u32 %s170_s0, 4  ;;  %s136_s15 = smov [#allocation3]   ;;  %s17_s14 = int_to_ptr.hbm [resolvable:$true] %s16_s14 }
   0x2   :  { %s18_s16 = sshll.u32 %s136_s15, 4  ;;  %s19_s16 = int_to_ptr.vmem [resolvable:$true] %s18_s16 }
   0x3   :  { %21 = dma.hbm_to_vmem [thread:$0]  %s17_s14, 128, %s19_s16, [#allocation4]  }
   0x4   :  { %132 = dma.done.wait [#allocation4], 128  }
   0x5   :  { %133 = vsyncadd [#allocation4], 4294967168  ;;  %vm34_vm0 = vcmask 261120   ;;  %v30_v0 = vld [vmem:[#allocation3] sm:$0xff]  ;;  %v33_v2 = vstv %s172_s2  ;;  %s137_s0 = smov [#allocation6]   ;;  %s70_s24 = sshll.u32 %s173_s3, 4  ;;  %s71_s24 = int_to_ptr.hbm [resolvable:$true] %s70_s24 }
   0x6   :  { %80 = vmatpush.xpose.msk.msra.mxu0 %vm34_vm0, %v30_v0  ;;  %v31_v1 = vld [vmem:[%s171_s1] sm:$0x1]  ;;  %s68_s21 = sshll.u32 %s137_s0, 4  ;;  %vm61_vm1 = vcmask 57344   ;;  %s69_s21 = int_to_ptr.vmem [resolvable:$true] %s68_s21 }
   0x9   :  { %81 = vmatmul.msk.f32.vlgmr.msra.gmra.mxu0 %vm34_vm0, %v31_v1 }
  0x86   :  { %v58_v3 = vpop.f32.mrf.mxu0 }
  0x87   :  { %v59_v4 = vadd.f32 %v58_v3, %v33_v2 }
  0x89   :  { %62 = vst.msk [vmem:[#allocation6] sm:$0x1] %vm61_vm1, %v59_v4 }
  0x8a   :  { %73 = dma.vmem_to_hbm [thread:$0]  %s69_s21, 16, %s71_s24, [#allocation5]  }
  0x8b   :  { %134 = dma.done.wait [#allocation5], 16  }
  0x8c   :  { %135 = vsyncadd [#allocation5], 4294967280 }
  0x8d   :  { %78 = vsyncpa [#allocation4], 1 }
  0x8e   :  { %79 = vsyncpa [#allocation5], 1 }

</bundles_post_ra>
